<compile_context>
chip_gen: v6e
topology: v6e:2x2x1
jax: 0.10.0
libtpu: 0.0.40
codegen_flags: <defaults>
</compile_context>

<pallas_src>
import math

import jax
import jax.numpy as jnp
from jax.experimental import pallas as pl
from jax.experimental.pallas import tpu as pltpu

# ------------------ synthetic ByT5-like config (small) ------------------
VOCAB = 64
D_MODEL = 32
NUM_HEADS = 4
D_KV = 8                      # inner dim = NUM_HEADS * D_KV = D_MODEL
D_FF = 64
NUM_LAYERS = 2
NUM_BUCKETS = 32
MAX_DISTANCE = 128
LN_EPS = 1e-6
NUM_LABELS = 2
LOGITS_PAD = 128              # lane-dense padded width of the final logits store


# ============================ in-kernel helpers ============================

def _rmsnorm(x, w):
    # T5 LayerNorm: no mean subtraction, no bias.  x: (S, D) f32, w: (1, D) f32.
    var = jnp.mean(x * x, axis=-1, keepdims=True)
    return x * jax.lax.rsqrt(var + LN_EPS) * w


def _gelu_new(x):
    return 0.5 * x * (1.0 + jnp.tanh(0.7978845608028654 * (x + 0.044715 * x * x * x)))


# ============================ fused encoder-layer kernel ============================

def _encoder_layer_kernel(h_ref, mask_ref, pos_bias_ref, ln_attn_ref,
                          wq_ref, wk_ref, wv_ref, wo_ref,
                          ln_ff_ref, wi0_ref, wi1_ref, wo_ff_ref, out_ref):
    # One batch element per grid step: h_ref (S, D) f32, mask_ref (1, S) f32,
    # pos_bias_ref (H, S, S) f32, weights bf16.
    h = h_ref[...]                                                  # (S, D) f32
    mask_bias = (1.0 - mask_ref[...]) * jnp.float32(-1e9)           # (1, S)

    # ---- self-attention sub-layer (pre-RMSNorm, residual in-kernel) ----
    ln = _rmsnorm(h, ln_attn_ref[...]).astype(jnp.bfloat16)         # (S, D) bf16
    q = jnp.dot(ln, wq_ref[...], preferred_element_type=jnp.float32)
    k = jnp.dot(ln, wk_ref[...], preferred_element_type=jnp.float32)
    v = jnp.dot(ln, wv_ref[...], preferred_element_type=jnp.float32)

    head_outs = []
    for hd in range(NUM_HEADS):                                     # static head loop
        sl = slice(hd * D_KV, (hd + 1) * D_KV)
        qh = q[:, sl].astype(jnp.bfloat16)
        kh = k[:, sl].astype(jnp.bfloat16)
        vh = v[:, sl].astype(jnp.bfloat16)
        # T5: no 1/sqrt(d) scaling; contract last dims directly (no k.T transpose).
        scores = jax.lax.dot_general(qh, kh, (((1,), (1,)), ((), ())),
                                     preferred_element_type=jnp.float32)
        scores = scores + pos_bias_ref[hd] + mask_bias              # (S, S)
        scores = scores - jnp.max(scores, axis=-1, keepdims=True)
        p = jnp.exp(scores)
        p = p * pl.reciprocal(jnp.sum(p, axis=-1, keepdims=True), approx=True)
        head_outs.append(jnp.dot(p.astype(jnp.bfloat16), vh,
                                 preferred_element_type=jnp.float32))
    attn = jnp.concatenate(head_outs, axis=-1)                      # (S, H*Dh) f32
    h = h + jnp.dot(attn.astype(jnp.bfloat16), wo_ref[...],
                    preferred_element_type=jnp.float32)             # residual

    # ---- gated-GELU feed-forward sub-layer (pre-RMSNorm, residual in-kernel) ----
    ln2 = _rmsnorm(h, ln_ff_ref[...]).astype(jnp.bfloat16)
    h_gelu = _gelu_new(jnp.dot(ln2, wi0_ref[...], preferred_element_type=jnp.float32))
    h_lin = jnp.dot(ln2, wi1_ref[...], preferred_element_type=jnp.float32)
    ff = jnp.dot((h_gelu * h_lin).astype(jnp.bfloat16), wo_ff_ref[...],
                 preferred_element_type=jnp.float32)
    out_ref[...] = h + ff


def pallas_encoder_layer(h, mask3, pos_bias, lp):
    B, S, D = h.shape
    H, Dh, F = NUM_HEADS, D_KV, D_FF
    return pl.pallas_call(
        _encoder_layer_kernel,
        out_shape=jax.ShapeDtypeStruct((B, S, D), jnp.float32),
        grid=(B,),
        in_specs=[
            pl.BlockSpec((None, S, D), lambda b: (b, 0, 0)),        # h
            pl.BlockSpec((None, 1, S), lambda b: (b, 0, 0)),        # attention mask
            pl.BlockSpec((H, S, S), lambda b: (0, 0, 0)),           # shared position bias
            pl.BlockSpec((1, D), lambda b: (0, 0)),                 # ln_attn
            pl.BlockSpec((D, H * Dh), lambda b: (0, 0)),            # wq
            pl.BlockSpec((D, H * Dh), lambda b: (0, 0)),            # wk
            pl.BlockSpec((D, H * Dh), lambda b: (0, 0)),            # wv
            pl.BlockSpec((H * Dh, D), lambda b: (0, 0)),            # wo
            pl.BlockSpec((1, D), lambda b: (0, 0)),                 # ln_ff
            pl.BlockSpec((D, F), lambda b: (0, 0)),                 # wi0
            pl.BlockSpec((D, F), lambda b: (0, 0)),                 # wi1
            pl.BlockSpec((F, D), lambda b: (0, 0)),                 # wo_ff
        ],
        out_specs=pl.BlockSpec((None, S, D), lambda b: (b, 0, 0)),
        compiler_params=pltpu.CompilerParams(dimension_semantics=("parallel",)),
    )(h, mask3, pos_bias, lp["ln_attn"], lp["wq"], lp["wk"], lp["wv"], lp["wo"],
      lp["ln_ff"], lp["wi0"], lp["wi1"], lp["wo_ff"])


# ============================ fused tail kernel ============================
# final RMSNorm + masked mean pooling + 5-layer Linear/ReLU classifier head.

def _tail_kernel(h_ref, mask_ref, gln_ref,
                 w1, b1, w2, b2, w3, b3, w4, b4, w5, b5, o_ref):
    h = h_ref[...]                                                  # (S, D) f32
    m = mask_ref[...]                                               # (1, S) f32
    hn = _rmsnorm(h, gln_ref[...])                                  # (S, D) f32

    # masked mean pooling over the sequence axis (matches mean_pooling)
    pooled = jnp.dot(m, hn, preferred_element_type=jnp.float32)     # (1, D) sum
    denom = jnp.maximum(jnp.sum(m, axis=-1, keepdims=True), 1e-9)   # (1, 1)
    pooled = pooled * pl.reciprocal(denom, approx=True)

    # classifier: Linear(d,1024) ReLU Linear(1024,512) ReLU Linear(512,256) ReLU
    #             Linear(256,128) ReLU Linear(128,num_labels)  (last layer lane-padded)
    x = pooled.astype(jnp.bfloat16)
    x = jnp.maximum(jnp.dot(x, w1[...], preferred_element_type=jnp.float32) + b1[...],
                    0.0).astype(jnp.bfloat16)
    x = jnp.maximum(jnp.dot(x, w2[...], preferred_element_type=jnp.float32) + b2[...],
                    0.0).astype(jnp.bfloat16)
    x = jnp.maximum(jnp.dot(x, w3[...], preferred_element_type=jnp.float32) + b3[...],
                    0.0).astype(jnp.bfloat16)
    x = jnp.maximum(jnp.dot(x, w4[...], preferred_element_type=jnp.float32) + b4[...],
                    0.0).astype(jnp.bfloat16)
    o_ref[...] = jnp.dot(x, w5[...], preferred_element_type=jnp.float32) + b5[...]


def pallas_encoder_tail(h, mask3, final_ln, cls_params):
    B, S, D = h.shape
    in_specs = [pl.BlockSpec((None, S, D), lambda b: (b, 0, 0)),
                pl.BlockSpec((None, 1, S), lambda b: (b, 0, 0)),
                pl.BlockSpec((1, D), lambda b: (0, 0))]
    args = [h, mask3, final_ln]
    for (w, bias) in cls_params:
        in_specs += [pl.BlockSpec(w.shape, lambda b: (0, 0)),
                     pl.BlockSpec(bias.shape, lambda b: (0, 0))]
        args += [w, bias]
    out = pl.pallas_call(
        _tail_kernel,
        out_shape=jax.ShapeDtypeStruct((B, 1, LOGITS_PAD), jnp.float32),
        grid=(B,),
        in_specs=in_specs,
        out_specs=pl.BlockSpec((None, 1, LOGITS_PAD), lambda b: (b, 0, 0)),
        compiler_params=pltpu.CompilerParams(dimension_semantics=("parallel",)),
    )(*args)
    return out[:, 0, :NUM_LABELS]                                   # (B, num_labels)


# ============================ JAX glue ============================

def relative_position_bucket(relative_position,
                             num_buckets=NUM_BUCKETS, max_distance=MAX_DISTANCE):
    # bidirectional (encoder) bucketization, as in HF T5
    num_buckets = num_buckets // 2
    relative_buckets = (relative_position > 0).astype(jnp.int32) * num_buckets
    rp = jnp.abs(relative_position)
    max_exact = num_buckets // 2
    is_small = rp < max_exact
    rp_safe = jnp.maximum(rp, 1)        # guard log(0); small branch is used there anyway
    rp_large = max_exact + (
        jnp.log(rp_safe.astype(jnp.float32) / max_exact)
        / math.log(max_distance / max_exact)
        * (num_buckets - max_exact)
    ).astype(jnp.int32)
    rp_large = jnp.minimum(rp_large, num_buckets - 1)
    return relative_buckets + jnp.where(is_small, rp, rp_large)


def init_params(key):
    keys = iter(jax.random.split(key, 64))

    def nrm(shape, scale=0.05, dtype=jnp.bfloat16):
        return (scale * jax.random.normal(next(keys), shape)).astype(dtype)

    params = {
        "embed": nrm((VOCAB, D_MODEL), dtype=jnp.float32),
        "rel_bias": nrm((NUM_BUCKETS, NUM_HEADS), dtype=jnp.float32),
        "final_ln": jnp.ones((1, D_MODEL), jnp.float32),
        "layers": [],
    }
    for _ in range(NUM_LAYERS):
        params["layers"].append({
            "ln_attn": jnp.ones((1, D_MODEL), jnp.float32),
            "wq": nrm((D_MODEL, NUM_HEADS * D_KV)),
            "wk": nrm((D_MODEL, NUM_HEADS * D_KV)),
            "wv": nrm((D_MODEL, NUM_HEADS * D_KV)),
            "wo": nrm((NUM_HEADS * D_KV, D_MODEL)),
            "ln_ff": jnp.ones((1, D_MODEL), jnp.float32),
            "wi0": nrm((D_MODEL, D_FF)),
            "wi1": nrm((D_MODEL, D_FF)),
            "wo_ff": nrm((D_FF, D_MODEL)),
        })
    dims = [D_MODEL, 1024, 512, 256, 128, NUM_LABELS]
    cls = []
    for i in range(5):
        w = nrm((dims[i], dims[i + 1]))
        b = jnp.zeros((1, dims[i + 1]), jnp.float32)
        if i == 4:  # pad the final layer to 128 output lanes (lane-dense store)
            w = jnp.zeros((dims[i], LOGITS_PAD), jnp.bfloat16).at[:, :dims[i + 1]].set(w)
            b = jnp.zeros((1, LOGITS_PAD), jnp.float32).at[:, :dims[i + 1]].set(b)
        cls.append((w, b))
    params["classifier"] = cls
    return params


def byt5_classifier_forward(params, input_ids, attention_mask, labels=None):
    B, S = input_ids.shape
    mask_f = attention_mask.astype(jnp.float32)
    mask3 = mask_f[:, None, :]                                       # (B, 1, S)

    # token embedding lookup (glue)
    h = params["embed"][input_ids]                                   # (B, S, D) f32

    # relative position bias, shared across all encoder layers (glue: bucket math + gather)
    ctx = jnp.arange(S)[:, None]
    mem = jnp.arange(S)[None, :]
    buckets = relative_position_bucket(mem - ctx)                    # (S, S)
    pos_bias = jnp.transpose(params["rel_bias"][buckets], (2, 0, 1)) # (H, S, S)
    pos_bias = pos_bias.astype(jnp.float32)

    # encoder: one fused Pallas kernel per layer (dropout is a no-op in eval mode)
    for lp in params["layers"]:
        h = pallas_encoder_layer(h, mask3, pos_bias, lp)

    # fused tail: final RMSNorm + masked mean pooling + classifier head
    logits = pallas_encoder_tail(h, mask3, params["final_ln"], params["classifier"])

    loss = None
    if labels is not None:
        # TODO(synk): nn.CrossEntropyLoss implemented as plain-JAX log-softmax + NLL glue
        logp = jax.nn.log_softmax(logits, axis=-1)
        loss = -jnp.mean(jnp.take_along_axis(logp, labels[:, None], axis=1))
    return {"loss": loss, "logits": logits}


if __name__ == "__main__":
    key = jax.random.PRNGKey(0)
    pkey, ikey = jax.random.split(key)
    params = init_params(pkey)

    B, S = 2, 8
    input_ids = jax.random.randint(ikey, (B, S), 0, VOCAB, dtype=jnp.int32)
    lengths = jnp.array([8, 5])
    attention_mask = (jnp.arange(S)[None, :] < lengths[:, None]).astype(jnp.int32)
    labels = jnp.array([0, 1], dtype=jnp.int32)

    out = byt5_classifier_forward(params, input_ids, attention_mask, labels=labels)
    jax.block_until_ready(out["logits"])
    jax.block_until_ready(out["loss"])
    assert out["logits"].shape == (B, NUM_LABELS)
    print("KERNEL_OK")
</pallas_src>

<mosaic_0001>
module attributes {stable_mosaic.version = 11 : i64} {
  func.func @_encoder_layer_kernel(%arg0: i32, %arg1: memref<1x8x32xf32, #tpu.memory_space<vmem>>, %arg2: memref<1x1x8xf32, #tpu.memory_space<vmem>>, %arg3: memref<4x8x8xf32, #tpu.memory_space<vmem>>, %arg4: memref<1x32xf32, #tpu.memory_space<vmem>>, %arg5: memref<32x32xbf16, #tpu.memory_space<vmem>>, %arg6: memref<32x32xbf16, #tpu.memory_space<vmem>>, %arg7: memref<32x32xbf16, #tpu.memory_space<vmem>>, %arg8: memref<32x32xbf16, #tpu.memory_space<vmem>>, %arg9: memref<1x32xf32, #tpu.memory_space<vmem>>, %arg10: memref<32x64xbf16, #tpu.memory_space<vmem>>, %arg11: memref<32x64xbf16, #tpu.memory_space<vmem>>, %arg12: memref<64x32xbf16, #tpu.memory_space<vmem>>, %arg13: memref<1x8x32xf32, #tpu.memory_space<vmem>>) attributes {dimension_semantics = [#tpu.dimension_semantics<parallel>], iteration_bounds = array<i64: 2>, scalar_prefetch = 0 : i64, scratch_operands = 0 : i64, tpu.core_type = #tpu.core_type<tc>, window_params = [{transform_indices = @transform_0, window_bounds = array<i64: 1, 8, 32>}, {transform_indices = @transform_1, window_bounds = array<i64: 1, 1, 8>}, {pipeline_mode = #tpu.pipeline_mode<synchronous>, transform_indices = @transform_2, window_bounds = array<i64: 4, 8, 8>}, {pipeline_mode = #tpu.pipeline_mode<synchronous>, transform_indices = @transform_3, window_bounds = array<i64: 1, 32>}, {pipeline_mode = #tpu.pipeline_mode<synchronous>, transform_indices = @transform_4, window_bounds = array<i64: 32, 32>}, {pipeline_mode = #tpu.pipeline_mode<synchronous>, transform_indices = @transform_5, window_bounds = array<i64: 32, 32>}, {pipeline_mode = #tpu.pipeline_mode<synchronous>, transform_indices = @transform_6, window_bounds = array<i64: 32, 32>}, {pipeline_mode = #tpu.pipeline_mode<synchronous>, transform_indices = @transform_7, window_bounds = array<i64: 32, 32>}, {pipeline_mode = #tpu.pipeline_mode<synchronous>, transform_indices = @transform_8, window_bounds = array<i64: 1, 32>}, {pipeline_mode = #tpu.pipeline_mode<synchronous>, transform_indices = @transform_9, window_bounds = array<i64: 32, 64>}, {pipeline_mode = #tpu.pipeline_mode<synchronous>, transform_indices = @transform_10, window_bounds = array<i64: 32, 64>}, {pipeline_mode = #tpu.pipeline_mode<synchronous>, transform_indices = @transform_11, window_bounds = array<i64: 64, 32>}, {transform_indices = @transform_12, window_bounds = array<i64: 1, 8, 32>}]} {
    %c0 = arith.constant 0 : index
    %c0_0 = arith.constant 0 : index
    %c0_1 = arith.constant 0 : index
    %0 = vector.load %arg1[%c0, %c0_0, %c0_1] : memref<1x8x32xf32, #tpu.memory_space<vmem>>, vector<1x8x32xf32>
    %1 = vector.shape_cast %0 : vector<1x8x32xf32> to vector<8x32xf32>
    %c0_2 = arith.constant 0 : index
    %c0_3 = arith.constant 0 : index
    %c0_4 = arith.constant 0 : index
    %2 = vector.load %arg2[%c0_2, %c0_3, %c0_4] : memref<1x1x8xf32, #tpu.memory_space<vmem>>, vector<1x1x8xf32>
    %3 = vector.shape_cast %2 : vector<1x1x8xf32> to vector<1x8xf32>
    %cst = arith.constant 1.000000e+00 : f32
    %4 = vector.broadcast %cst : f32 to vector<1x8xf32>
    %5 = arith.subf %4, %3 : vector<1x8xf32>
    %cst_5 = arith.constant -1.000000e+09 : f32
    %6 = vector.broadcast %cst_5 : f32 to vector<1x8xf32>
    %7 = arith.mulf %5, %6 : vector<1x8xf32>
    %c0_6 = arith.constant 0 : index
    %c0_7 = arith.constant 0 : index
    %8 = vector.load %arg4[%c0_6, %c0_7] : memref<1x32xf32, #tpu.memory_space<vmem>>, vector<1x32xf32>
    %9 = arith.mulf %1, %1 : vector<8x32xf32>
    %cst_8 = arith.constant dense<0.000000e+00> : vector<8xf32>
    %10 = vector.multi_reduction <add>, %9, %cst_8 [1] : vector<8x32xf32> to vector<8xf32>
    %11 = vector.shape_cast %10 : vector<8xf32> to vector<8x1xf32>
    %cst_9 = arith.constant 3.200000e+01 : f32
    %12 = vector.broadcast %cst_9 : f32 to vector<8x1xf32>
    %13 = arith.divf %11, %12 : vector<8x1xf32>
    %cst_10 = arith.constant 9.99999997E-7 : f32
    %14 = vector.broadcast %cst_10 : f32 to vector<8x1xf32>
    %15 = arith.addf %13, %14 : vector<8x1xf32>
    %16 = math.rsqrt %15 : vector<8x1xf32>
    %17 = vector.broadcast %16 : vector<8x1xf32> to vector<8x32xf32>
    %18 = arith.mulf %1, %17 : vector<8x32xf32>
    %19 = vector.broadcast %8 : vector<1x32xf32> to vector<8x32xf32>
    %20 = arith.mulf %18, %19 : vector<8x32xf32>
    %21 = arith.truncf %20 : vector<8x32xf32> to vector<8x32xbf16>
    %c0_11 = arith.constant 0 : index
    %c0_12 = arith.constant 0 : index
    %22 = vector.load %arg5[%c0_11, %c0_12] : memref<32x32xbf16, #tpu.memory_space<vmem>>, vector<32x32xbf16>
    %cst_13 = arith.constant dense<0.000000e+00> : vector<8x32xf32>
    %23 = tpu.matmul %21, %22, %cst_13 {dimension_numbers = #tpu.dot_dimension_numbers<[1], [0], [0], [1], [0, 0, 1, 1], [], []>} : vector<8x32xbf16>, vector<32x32xbf16>, vector<8x32xf32> -> vector<8x32xf32>
    %c0_14 = arith.constant 0 : index
    %c0_15 = arith.constant 0 : index
    %24 = vector.load %arg6[%c0_14, %c0_15] : memref<32x32xbf16, #tpu.memory_space<vmem>>, vector<32x32xbf16>
    %cst_16 = arith.constant dense<0.000000e+00> : vector<8x32xf32>
    %25 = tpu.matmul %21, %24, %cst_16 {dimension_numbers = #tpu.dot_dimension_numbers<[1], [0], [0], [1], [0, 0, 1, 1], [], []>} : vector<8x32xbf16>, vector<32x32xbf16>, vector<8x32xf32> -> vector<8x32xf32>
    %c0_17 = arith.constant 0 : index
    %c0_18 = arith.constant 0 : index
    %26 = vector.load %arg7[%c0_17, %c0_18] : memref<32x32xbf16, #tpu.memory_space<vmem>>, vector<32x32xbf16>
    %cst_19 = arith.constant dense<0.000000e+00> : vector<8x32xf32>
    %27 = tpu.matmul %21, %26, %cst_19 {dimension_numbers = #tpu.dot_dimension_numbers<[1], [0], [0], [1], [0, 0, 1, 1], [], []>} : vector<8x32xbf16>, vector<32x32xbf16>, vector<8x32xf32> -> vector<8x32xf32>
    %28 = vector.extract_strided_slice %23 {offsets = [0, 0], sizes = [8, 8], strides = [1, 1]} : vector<8x32xf32> to vector<8x8xf32>
    %29 = arith.truncf %28 : vector<8x8xf32> to vector<8x8xbf16>
    %30 = vector.extract_strided_slice %25 {offsets = [0, 0], sizes = [8, 8], strides = [1, 1]} : vector<8x32xf32> to vector<8x8xf32>
    %31 = arith.truncf %30 : vector<8x8xf32> to vector<8x8xbf16>
    %32 = vector.extract_strided_slice %27 {offsets = [0, 0], sizes = [8, 8], strides = [1, 1]} : vector<8x32xf32> to vector<8x8xf32>
    %33 = arith.truncf %32 : vector<8x8xf32> to vector<8x8xbf16>
    %cst_20 = arith.constant dense<0.000000e+00> : vector<8x8xf32>
    %34 = tpu.matmul %29, %31, %cst_20 {dimension_numbers = #tpu.dot_dimension_numbers<[1], [1], [0], [0], [0, 0, 1, 0], [], []>} : vector<8x8xbf16>, vector<8x8xbf16>, vector<8x8xf32> -> vector<8x8xf32>
    %c0_21 = arith.constant 0 : index
    %c0_22 = arith.constant 0 : index
    %c0_23 = arith.constant 0 : index
    %35 = vector.load %arg3[%c0_21, %c0_22, %c0_23] : memref<4x8x8xf32, #tpu.memory_space<vmem>>, vector<1x8x8xf32>
    %36 = vector.shape_cast %35 : vector<1x8x8xf32> to vector<8x8xf32>
    %37 = arith.addf %34, %36 : vector<8x8xf32>
    %38 = vector.broadcast %7 : vector<1x8xf32> to vector<8x8xf32>
    %39 = arith.addf %37, %38 : vector<8x8xf32>
    %cst_24 = arith.constant dense<0xFF800000> : vector<8xf32>
    %40 = vector.multi_reduction <maximumf>, %39, %cst_24 [1] : vector<8x8xf32> to vector<8xf32>
    %41 = vector.shape_cast %40 : vector<8xf32> to vector<8x1xf32>
    %42 = vector.broadcast %41 : vector<8x1xf32> to vector<8x8xf32>
    %43 = arith.subf %39, %42 : vector<8x8xf32>
    %44 = math.exp %43 : vector<8x8xf32>
    %cst_25 = arith.constant dense<0.000000e+00> : vector<8xf32>
    %45 = vector.multi_reduction <add>, %44, %cst_25 [1] : vector<8x8xf32> to vector<8xf32>
    %46 = vector.shape_cast %45 : vector<8xf32> to vector<8x1xf32>
    %47 = tpu.reciprocal %46 {approx = true} : vector<8x1xf32> -> vector<8x1xf32>
    %48 = vector.broadcast %47 : vector<8x1xf32> to vector<8x8xf32>
    %49 = arith.mulf %44, %48 : vector<8x8xf32>
    %50 = arith.truncf %49 : vector<8x8xf32> to vector<8x8xbf16>
    %cst_26 = arith.constant dense<0.000000e+00> : vector<8x8xf32>
    %51 = tpu.matmul %50, %33, %cst_26 {dimension_numbers = #tpu.dot_dimension_numbers<[1], [0], [0], [1], [0, 0, 1, 1], [], []>} : vector<8x8xbf16>, vector<8x8xbf16>, vector<8x8xf32> -> vector<8x8xf32>
    %52 = vector.extract_strided_slice %23 {offsets = [0, 8], sizes = [8, 8], strides = [1, 1]} : vector<8x32xf32> to vector<8x8xf32>
    %53 = arith.truncf %52 : vector<8x8xf32> to vector<8x8xbf16>
    %54 = vector.extract_strided_slice %25 {offsets = [0, 8], sizes = [8, 8], strides = [1, 1]} : vector<8x32xf32> to vector<8x8xf32>
    %55 = arith.truncf %54 : vector<8x8xf32> to vector<8x8xbf16>
    %56 = vector.extract_strided_slice %27 {offsets = [0, 8], sizes = [8, 8], strides = [1, 1]} : vector<8x32xf32> to vector<8x8xf32>
    %57 = arith.truncf %56 : vector<8x8xf32> to vector<8x8xbf16>
    %cst_27 = arith.constant dense<0.000000e+00> : vector<8x8xf32>
    %58 = tpu.matmul %53, %55, %cst_27 {dimension_numbers = #tpu.dot_dimension_numbers<[1], [1], [0], [0], [0, 0, 1, 0], [], []>} : vector<8x8xbf16>, vector<8x8xbf16>, vector<8x8xf32> -> vector<8x8xf32>
    %c1 = arith.constant 1 : index
    %c0_28 = arith.constant 0 : index
    %c0_29 = arith.constant 0 : index
    %59 = vector.load %arg3[%c1, %c0_28, %c0_29] : memref<4x8x8xf32, #tpu.memory_space<vmem>>, vector<1x8x8xf32>
    %60 = vector.shape_cast %59 : vector<1x8x8xf32> to vector<8x8xf32>
    %61 = arith.addf %58, %60 : vector<8x8xf32>
    %62 = vector.broadcast %7 : vector<1x8xf32> to vector<8x8xf32>
    %63 = arith.addf %61, %62 : vector<8x8xf32>
    %cst_30 = arith.constant dense<0xFF800000> : vector<8xf32>
    %64 = vector.multi_reduction <maximumf>, %63, %cst_30 [1] : vector<8x8xf32> to vector<8xf32>
    %65 = vector.shape_cast %64 : vector<8xf32> to vector<8x1xf32>
    %66 = vector.broadcast %65 : vector<8x1xf32> to vector<8x8xf32>
    %67 = arith.subf %63, %66 : vector<8x8xf32>
    %68 = math.exp %67 : vector<8x8xf32>
    %cst_31 = arith.constant dense<0.000000e+00> : vector<8xf32>
    %69 = vector.multi_reduction <add>, %68, %cst_31 [1] : vector<8x8xf32> to vector<8xf32>
    %70 = vector.shape_cast %69 : vector<8xf32> to vector<8x1xf32>
    %71 = tpu.reciprocal %70 {approx = true} : vector<8x1xf32> -> vector<8x1xf32>
    %72 = vector.broadcast %71 : vector<8x1xf32> to vector<8x8xf32>
    %73 = arith.mulf %68, %72 : vector<8x8xf32>
    %74 = arith.truncf %73 : vector<8x8xf32> to vector<8x8xbf16>
    %cst_32 = arith.constant dense<0.000000e+00> : vector<8x8xf32>
    %75 = tpu.matmul %74, %57, %cst_32 {dimension_numbers = #tpu.dot_dimension_numbers<[1], [0], [0], [1], [0, 0, 1, 1], [], []>} : vector<8x8xbf16>, vector<8x8xbf16>, vector<8x8xf32> -> vector<8x8xf32>
    %76 = vector.extract_strided_slice %23 {offsets = [0, 16], sizes = [8, 8], strides = [1, 1]} : vector<8x32xf32> to vector<8x8xf32>
    %77 = arith.truncf %76 : vector<8x8xf32> to vector<8x8xbf16>
    %78 = vector.extract_strided_slice %25 {offsets = [0, 16], sizes = [8, 8], strides = [1, 1]} : vector<8x32xf32> to vector<8x8xf32>
    %79 = arith.truncf %78 : vector<8x8xf32> to vector<8x8xbf16>
    %80 = vector.extract_strided_slice %27 {offsets = [0, 16], sizes = [8, 8], strides = [1, 1]} : vector<8x32xf32> to vector<8x8xf32>
    %81 = arith.truncf %80 : vector<8x8xf32> to vector<8x8xbf16>
    %cst_33 = arith.constant dense<0.000000e+00> : vector<8x8xf32>
    %82 = tpu.matmul %77, %79, %cst_33 {dimension_numbers = #tpu.dot_dimension_numbers<[1], [1], [0], [0], [0, 0, 1, 0], [], []>} : vector<8x8xbf16>, vector<8x8xbf16>, vector<8x8xf32> -> vector<8x8xf32>
    %c2 = arith.constant 2 : index
    %c0_34 = arith.constant 0 : index
    %c0_35 = arith.constant 0 : index
    %83 = vector.load %arg3[%c2, %c0_34, %c0_35] : memref<4x8x8xf32, #tpu.memory_space<vmem>>, vector<1x8x8xf32>
    %84 = vector.shape_cast %83 : vector<1x8x8xf32> to vector<8x8xf32>
    %85 = arith.addf %82, %84 : vector<8x8xf32>
    %86 = vector.broadcast %7 : vector<1x8xf32> to vector<8x8xf32>
    %87 = arith.addf %85, %86 : vector<8x8xf32>
    %cst_36 = arith.constant dense<0xFF800000> : vector<8xf32>
    %88 = vector.multi_reduction <maximumf>, %87, %cst_36 [1] : vector<8x8xf32> to vector<8xf32>
    %89 = vector.shape_cast %88 : vector<8xf32> to vector<8x1xf32>
    %90 = vector.broadcast %89 : vector<8x1xf32> to vector<8x8xf32>
    %91 = arith.subf %87, %90 : vector<8x8xf32>
    %92 = math.exp %91 : vector<8x8xf32>
    %cst_37 = arith.constant dense<0.000000e+00> : vector<8xf32>
    %93 = vector.multi_reduction <add>, %92, %cst_37 [1] : vector<8x8xf32> to vector<8xf32>
    %94 = vector.shape_cast %93 : vector<8xf32> to vector<8x1xf32>
    %95 = tpu.reciprocal %94 {approx = true} : vector<8x1xf32> -> vector<8x1xf32>
    %96 = vector.broadcast %95 : vector<8x1xf32> to vector<8x8xf32>
    %97 = arith.mulf %92, %96 : vector<8x8xf32>
    %98 = arith.truncf %97 : vector<8x8xf32> to vector<8x8xbf16>
    %cst_38 = arith.constant dense<0.000000e+00> : vector<8x8xf32>
    %99 = tpu.matmul %98, %81, %cst_38 {dimension_numbers = #tpu.dot_dimension_numbers<[1], [0], [0], [1], [0, 0, 1, 1], [], []>} : vector<8x8xbf16>, vector<8x8xbf16>, vector<8x8xf32> -> vector<8x8xf32>
    %100 = vector.extract_strided_slice %23 {offsets = [0, 24], sizes = [8, 8], strides = [1, 1]} : vector<8x32xf32> to vector<8x8xf32>
    %101 = arith.truncf %100 : vector<8x8xf32> to vector<8x8xbf16>
    %102 = vector.extract_strided_slice %25 {offsets = [0, 24], sizes = [8, 8], strides = [1, 1]} : vector<8x32xf32> to vector<8x8xf32>
    %103 = arith.truncf %102 : vector<8x8xf32> to vector<8x8xbf16>
    %104 = vector.extract_strided_slice %27 {offsets = [0, 24], sizes = [8, 8], strides = [1, 1]} : vector<8x32xf32> to vector<8x8xf32>
    %105 = arith.truncf %104 : vector<8x8xf32> to vector<8x8xbf16>
    %cst_39 = arith.constant dense<0.000000e+00> : vector<8x8xf32>
    %106 = tpu.matmul %101, %103, %cst_39 {dimension_numbers = #tpu.dot_dimension_numbers<[1], [1], [0], [0], [0, 0, 1, 0], [], []>} : vector<8x8xbf16>, vector<8x8xbf16>, vector<8x8xf32> -> vector<8x8xf32>
    %c3 = arith.constant 3 : index
    %c0_40 = arith.constant 0 : index
    %c0_41 = arith.constant 0 : index
    %107 = vector.load %arg3[%c3, %c0_40, %c0_41] : memref<4x8x8xf32, #tpu.memory_space<vmem>>, vector<1x8x8xf32>
    %108 = vector.shape_cast %107 : vector<1x8x8xf32> to vector<8x8xf32>
    %109 = arith.addf %106, %108 : vector<8x8xf32>
    %110 = vector.broadcast %7 : vector<1x8xf32> to vector<8x8xf32>
    %111 = arith.addf %109, %110 : vector<8x8xf32>
    %cst_42 = arith.constant dense<0xFF800000> : vector<8xf32>
    %112 = vector.multi_reduction <maximumf>, %111, %cst_42 [1] : vector<8x8xf32> to vector<8xf32>
    %113 = vector.shape_cast %112 : vector<8xf32> to vector<8x1xf32>
    %114 = vector.broadcast %113 : vector<8x1xf32> to vector<8x8xf32>
    %115 = arith.subf %111, %114 : vector<8x8xf32>
    %116 = math.exp %115 : vector<8x8xf32>
    %cst_43 = arith.constant dense<0.000000e+00> : vector<8xf32>
    %117 = vector.multi_reduction <add>, %116, %cst_43 [1] : vector<8x8xf32> to vector<8xf32>
    %118 = vector.shape_cast %117 : vector<8xf32> to vector<8x1xf32>
    %119 = tpu.reciprocal %118 {approx = true} : vector<8x1xf32> -> vector<8x1xf32>
    %120 = vector.broadcast %119 : vector<8x1xf32> to vector<8x8xf32>
    %121 = arith.mulf %116, %120 : vector<8x8xf32>
    %122 = arith.truncf %121 : vector<8x8xf32> to vector<8x8xbf16>
    %cst_44 = arith.constant dense<0.000000e+00> : vector<8x8xf32>
    %123 = tpu.matmul %122, %105, %cst_44 {dimension_numbers = #tpu.dot_dimension_numbers<[1], [0], [0], [1], [0, 0, 1, 1], [], []>} : vector<8x8xbf16>, vector<8x8xbf16>, vector<8x8xf32> -> vector<8x8xf32>
    %124 = tpu.concatenate %51, %75, %99, %123 in 1 : vector<8x8xf32>, vector<8x8xf32>, vector<8x8xf32>, vector<8x8xf32> -> vector<8x32xf32>
    %125 = arith.truncf %124 : vector<8x32xf32> to vector<8x32xbf16>
    %c0_45 = arith.constant 0 : index
    %c0_46 = arith.constant 0 : index
    %126 = vector.load %arg8[%c0_45, %c0_46] : memref<32x32xbf16, #tpu.memory_space<vmem>>, vector<32x32xbf16>
    %cst_47 = arith.constant dense<0.000000e+00> : vector<8x32xf32>
    %127 = tpu.matmul %125, %126, %cst_47 {dimension_numbers = #tpu.dot_dimension_numbers<[1], [0], [0], [1], [0, 0, 1, 1], [], []>} : vector<8x32xbf16>, vector<32x32xbf16>, vector<8x32xf32> -> vector<8x32xf32>
    %128 = arith.addf %1, %127 : vector<8x32xf32>
    %c0_48 = arith.constant 0 : index
    %c0_49 = arith.constant 0 : index
    %129 = vector.load %arg9[%c0_48, %c0_49] : memref<1x32xf32, #tpu.memory_space<vmem>>, vector<1x32xf32>
    %130 = arith.mulf %128, %128 : vector<8x32xf32>
    %cst_50 = arith.constant dense<0.000000e+00> : vector<8xf32>
    %131 = vector.multi_reduction <add>, %130, %cst_50 [1] : vector<8x32xf32> to vector<8xf32>
    %132 = vector.shape_cast %131 : vector<8xf32> to vector<8x1xf32>
    %cst_51 = arith.constant 3.200000e+01 : f32
    %133 = vector.broadcast %cst_51 : f32 to vector<8x1xf32>
    %134 = arith.divf %132, %133 : vector<8x1xf32>
    %cst_52 = arith.constant 9.99999997E-7 : f32
    %135 = vector.broadcast %cst_52 : f32 to vector<8x1xf32>
    %136 = arith.addf %134, %135 : vector<8x1xf32>
    %137 = math.rsqrt %136 : vector<8x1xf32>
    %138 = vector.broadcast %137 : vector<8x1xf32> to vector<8x32xf32>
    %139 = arith.mulf %128, %138 : vector<8x32xf32>
    %140 = vector.broadcast %129 : vector<1x32xf32> to vector<8x32xf32>
    %141 = arith.mulf %139, %140 : vector<8x32xf32>
    %142 = arith.truncf %141 : vector<8x32xf32> to vector<8x32xbf16>
    %c0_53 = arith.constant 0 : index
    %c0_54 = arith.constant 0 : index
    %143 = vector.load %arg10[%c0_53, %c0_54] : memref<32x64xbf16, #tpu.memory_space<vmem>>, vector<32x64xbf16>
    %cst_55 = arith.constant dense<0.000000e+00> : vector<8x64xf32>
    %144 = tpu.matmul %142, %143, %cst_55 {dimension_numbers = #tpu.dot_dimension_numbers<[1], [0], [0], [1], [0, 0, 1, 1], [], []>} : vector<8x32xbf16>, vector<32x64xbf16>, vector<8x64xf32> -> vector<8x64xf32>
    %cst_56 = arith.constant 5.000000e-01 : f32
    %145 = vector.broadcast %cst_56 : f32 to vector<8x64xf32>
    %146 = arith.mulf %145, %144 : vector<8x64xf32>
    %cst_57 = arith.constant 4.471500e-02 : f32
    %147 = vector.broadcast %cst_57 : f32 to vector<8x64xf32>
    %148 = arith.mulf %147, %144 : vector<8x64xf32>
    %149 = arith.mulf %148, %144 : vector<8x64xf32>
    %150 = arith.mulf %149, %144 : vector<8x64xf32>
    %151 = arith.addf %144, %150 : vector<8x64xf32>
    %cst_58 = arith.constant 0.797884583 : f32
    %152 = vector.broadcast %cst_58 : f32 to vector<8x64xf32>
    %153 = arith.mulf %152, %151 : vector<8x64xf32>
    %154 = math.tanh %153 : vector<8x64xf32>
    %cst_59 = arith.constant 1.000000e+00 : f32
    %155 = vector.broadcast %cst_59 : f32 to vector<8x64xf32>
    %156 = arith.addf %155, %154 : vector<8x64xf32>
    %157 = arith.mulf %146, %156 : vector<8x64xf32>
    %c0_60 = arith.constant 0 : index
    %c0_61 = arith.constant 0 : index
    %158 = vector.load %arg11[%c0_60, %c0_61] : memref<32x64xbf16, #tpu.memory_space<vmem>>, vector<32x64xbf16>
    %cst_62 = arith.constant dense<0.000000e+00> : vector<8x64xf32>
    %159 = tpu.matmul %142, %158, %cst_62 {dimension_numbers = #tpu.dot_dimension_numbers<[1], [0], [0], [1], [0, 0, 1, 1], [], []>} : vector<8x32xbf16>, vector<32x64xbf16>, vector<8x64xf32> -> vector<8x64xf32>
    %160 = arith.mulf %157, %159 : vector<8x64xf32>
    %161 = arith.truncf %160 : vector<8x64xf32> to vector<8x64xbf16>
    %c0_63 = arith.constant 0 : index
    %c0_64 = arith.constant 0 : index
    %162 = vector.load %arg12[%c0_63, %c0_64] : memref<64x32xbf16, #tpu.memory_space<vmem>>, vector<64x32xbf16>
    %cst_65 = arith.constant dense<0.000000e+00> : vector<8x32xf32>
    %163 = tpu.matmul %161, %162, %cst_65 {dimension_numbers = #tpu.dot_dimension_numbers<[1], [0], [0], [1], [0, 0, 1, 1], [], []>} : vector<8x64xbf16>, vector<64x32xbf16>, vector<8x32xf32> -> vector<8x32xf32>
    %164 = arith.addf %128, %163 : vector<8x32xf32>
    %c0_66 = arith.constant 0 : index
    %c0_67 = arith.constant 0 : index
    %c0_68 = arith.constant 0 : index
    %165 = vector.load %arg13[%c0_66, %c0_67, %c0_68] : memref<1x8x32xf32, #tpu.memory_space<vmem>>, vector<1x8x32xf32>
    %166 = vector.shape_cast %165 : vector<1x8x32xf32> to vector<8x32xf32>
    %167 = vector.shape_cast %164 : vector<8x32xf32> to vector<1x8x32xf32>
    tpu.vector_store %arg13[%c0_66, %c0_67, %c0_68], %167 {strides = array<i32>} : memref<1x8x32xf32, #tpu.memory_space<vmem>>, vector<1x8x32xf32>,
    return
  }
  func.func @transform_0(%arg0: i32) -> (i32, i32, i32) {
    %c0_i32 = arith.constant 0 : i32
    %c0_i32_0 = arith.constant 0 : i32
    %c0_i32_1 = arith.constant 0 : i32
    return %arg0, %c0_i32, %c0_i32_0 : i32, i32, i32
  }
  func.func @transform_1(%arg0: i32) -> (i32, i32, i32) {
    %c0_i32 = arith.constant 0 : i32
    %c0_i32_0 = arith.constant 0 : i32
    %c0_i32_1 = arith.constant 0 : i32
    return %arg0, %c0_i32, %c0_i32_0 : i32, i32, i32
  }
  func.func @transform_2(%arg0: i32) -> (i32, i32, i32) {
    %c0_i32 = arith.constant 0 : i32
    %c0_i32_0 = arith.constant 0 : i32
    %c0_i32_1 = arith.constant 0 : i32
    %c0_i32_2 = arith.constant 0 : i32
    return %c0_i32, %c0_i32_0, %c0_i32_1 : i32, i32, i32
  }
  func.func @transform_3(%arg0: i32) -> (i32, i32) {
    %c0_i32 = arith.constant 0 : i32
    %c0_i32_0 = arith.constant 0 : i32
    %c0_i32_1 = arith.constant 0 : i32
    return %c0_i32, %c0_i32_0 : i32, i32
  }
  func.func @transform_4(%arg0: i32) -> (i32, i32) {
    %c0_i32 = arith.constant 0 : i32
    %c0_i32_0 = arith.constant 0 : i32
    %c0_i32_1 = arith.constant 0 : i32
    return %c0_i32, %c0_i32_0 : i32, i32
  }
  func.func @transform_5(%arg0: i32) -> (i32, i32) {
    %c0_i32 = arith.constant 0 : i32
    %c0_i32_0 = arith.constant 0 : i32
    %c0_i32_1 = arith.constant 0 : i32
    return %c0_i32, %c0_i32_0 : i32, i32
  }
  func.func @transform_6(%arg0: i32) -> (i32, i32) {
    %c0_i32 = arith.constant 0 : i32
    %c0_i32_0 = arith.constant 0 : i32
    %c0_i32_1 = arith.constant 0 : i32
    return %c0_i32, %c0_i32_0 : i32, i32
  }
  func.func @transform_7(%arg0: i32) -> (i32, i32) {
    %c0_i32 = arith.constant 0 : i32
    %c0_i32_0 = arith.constant 0 : i32
    %c0_i32_1 = arith.constant 0 : i32
    return %c0_i32, %c0_i32_0 : i32, i32
  }
  func.func @transform_8(%arg0: i32) -> (i32, i32) {
    %c0_i32 = arith.constant 0 : i32
    %c0_i32_0 = arith.constant 0 : i32
    %c0_i32_1 = arith.constant 0 : i32
    return %c0_i32, %c0_i32_0 : i32, i32
  }
  func.func @transform_9(%arg0: i32) -> (i32, i32) {
    %c0_i32 = arith.constant 0 : i32
    %c0_i32_0 = arith.constant 0 : i32
    %c0_i32_1 = arith.constant 0 : i32
    return %c0_i32, %c0_i32_0 : i32, i32
  }
  func.func @transform_10(%arg0: i32) -> (i32, i32) {
    %c0_i32 = arith.constant 0 : i32
    %c0_i32_0 = arith.constant 0 : i32
    %c0_i32_1 = arith.constant 0 : i32
    return %c0_i32, %c0_i32_0 : i32, i32
  }
  func.func @transform_11(%arg0: i32) -> (i32, i32) {
    %c0_i32 = arith.constant 0 : i32
    %c0_i32_0 = arith.constant 0 : i32
    %c0_i32_1 = arith.constant 0 : i32
    return %c0_i32, %c0_i32_0 : i32, i32
  }
  func.func @transform_12(%arg0: i32) -> (i32, i32, i32) {
    %c0_i32 = arith.constant 0 : i32
    %c0_i32_0 = arith.constant 0 : i32
    %c0_i32_1 = arith.constant 0 : i32
    return %arg0, %c0_i32, %c0_i32_0 : i32, i32, i32
  }
}

</mosaic_0001>

<bundles_post_ra>
// kernel: tpu_custom_call.1
= control target key start
LH: loop header
LB: loop body
LE: loop exit
PB: predicated region body
PF: predicated region fallthrough
CT: control target
= control target key end

     0   :  { %s2623_s0 = inlined_call_operand.vmem [shape: f32[2,8,32], index: 0, kind: input, shape index: {}]   ;;  %s2624_s1 = inlined_call_operand.vmem [shape: f32[2,1,8], index: 1, kind: input, shape index: {}]   ;;  %s2625_s2 = inlined_call_operand.vmem [shape: f32[4,8,8], index: 2, kind: input, shape index: {}]   ;;  %s2626_s3 = inlined_call_operand.vmem [shape: f32[1,32], index: 3, kind: input, shape index: {}]   ;;  %s2627_s4 = inlined_call_operand.hbm [shape: bf16[32,32], index: 4, kind: input, shape index: {}]   ;;  %s2628_s5 = inlined_call_operand.hbm [shape: bf16[32,32], index: 5, kind: input, shape index: {}]   ;;  %s2629_s6 = inlined_call_operand.hbm [shape: bf16[32,32], index: 6, kind: input, shape index: {}]   ;;  %s2630_s7 = inlined_call_operand.hbm [shape: bf16[32,32], index: 7, kind: input, shape index: {}]   ;;  %s2631_s8 = inlined_call_operand.vmem [shape: f32[1,32], index: 8, kind: input, shape index: {}]   ;;  %s2632_s9 = inlined_call_operand.hbm [shape: bf16[32,64], index: 9, kind: input, shape index: {}]   ;;  %s2633_s10 = inlined_call_operand.hbm [shape: bf16[32,64], index: 10, kind: input, shape index: {}]   ;;  %s2634_s11 = inlined_call_operand.vmem [shape: bf16[64,32], index: 11, kind: input, shape index: {}]   ;;  %s2635_s12 = inlined_call_operand.hbm [shape: f32[2,8,32], index: 12, kind: output, shape index: {}]  }
   0x1   :  { %2641 = sst [smem:[#allocation23_spill]] %s2628_s5 }
   0x2   :  { %17 = vsyncpa [#allocation3], 0 }
   0x3   :  { %18 = vsyncpa [#allocation6], 0 }
   0x4   :  { %19 = vsyncpa [#allocation9], 0 }
   0x5   :  { %20 = vsyncpa [#allocation12], 0 }
   0x6   :  { %21 = vsyncpa [#allocation4], 0 }
   0x7   :  { %23 = vsyncpa [#allocation4 + $0x1], 0  ;;  %s2275_s21 = smov 0   ;;  %s2277_s22 = smov 0  }
   0x8   :  { %s2279_s23 = smov 0   ;;  %s2281_s24 = smov 0  }
   0x9 LB: > { %2642 = sst [smem:[#allocation19_spill]] %s2187_s23  ;;  %s2296_s25 = sadd.s32 4294967295, %s2191_s24   ;;  %s2191_s24 = sphi %s2281_s24, %s2661_s24   ;;  %s2187_s23 = sphi %s2279_s23, %s2663_s23   ;;  %s2183_s22 = sphi %s2277_s22, %s2665_s22   ;;  %s2179_s21 = sphi %s2275_s21, %s2664_s21  }
   0xa   : > { %s1606_s26 = sadd.s32 4294967294, %s2191_s24   ;;  %s2300_s27 = sadd.s32 1, %s2191_s24  }
   0xb   : > { %2643 = sst [smem:[#allocation20_spill]] %s2300_s27  ;;  %s298_s28 = sadd.s32 1, %s2187_s23 }
   0xc   : > { %s295_s29 = ssub.s32 %s2191_s24, %s2300_s27  ;;  %p308_p0 = scmp.ne.s32.totalorder %s2187_s23, %s2183_s22 }
   0xd   : > { %p296_p1 = scmp.eq.s32.totalorder %s295_s29, 0  ;;  %p309_p2 = scmp.eq.s32.totalorder %s2296_s25, 1 }
   0xe   : > { %p314_p3 = scmp.ne.s32.totalorder %s2183_s22, %s2179_s21  ;;  %p315_p4 = scmp.eq.s32.totalorder %s1606_s26, 1 }
   0xf   : > { %s2311_s30 = scalar_select %p296_p1, %s2187_s23, %s298_s28  }
  0x10   : > { %p2313_p5 = por %p309_p2, %p308_p0  ;;  %p2317_p6 = por %p315_p4, %p314_p3 }
  0x11   : > { %2644 = sst [smem:[#allocation21_spill]] %s2311_s30  ;;  %p1607_p7 = scmp.ge.s32.totalorder %s2191_s24, 1 }
  0x12   : > { %s2646_s14 = scalar_select %p2317_p6, 1, 0 }
  0x13   : > { %p322_p8 = scmp.lt.s32.totalorder %s2191_s24, 3  ;;  %p2640_p9 = scmp.eq.s32.totalorder %s2296_s25, 0 }
  0x14   : > { %2647 = sst [smem:[#allocation22_spill]] %s2646_s14  ;;  %s2193_s16 = smov [#allocation5]  }
  0x15   : > { %p2324_p10 = pnand %p1607_p7, %p322_p8  ;;  %s353_s17 = sshll.u32 %s2193_s16, 4  ;;  %s354_s17 = int_to_ptr.vmem [resolvable:$true] %s353_s17 }
  0x16   : > { %s2194_s19 = smov [#allocation8]   ;;  %s2195_s26 = smov [#allocation2]  }
  0x17   : > { %p1837_p11 = pneg %p2324_p10  ;;  %s379_s20 = sshll.u32 %s2194_s19, 4  ;;  %s380_s20 = int_to_ptr.vmem [resolvable:$true] %s379_s20 }
  0x18   : > { %s340_s28 = sshll.u32 %s2195_s26, 4  ;;  %s1970_s30 = scalar_lea.vmem %s354_s17, 256  ;;  %s341_s28 = int_to_ptr.vmem [resolvable:$true] %s340_s28 }
  0x19   : > { %p2332_p12 = pnand %p2640_p9, %p1837_p11  ;;  %p1971_p0 = scmp.ne.s32.totalorder %s354_s17, %s1970_s30 }
  0x1a   : > { %p1978_p3 = scmp.lt.s32.totalorder %s354_s17, %s354_s17  ;;  %p1979_p4 = scmp.lt.s32.totalorder %s1970_s30, %s1970_s30 }
  0x1b   : > { %p2338_p13 = pneg %p2332_p12 }
  0x1c   : > { %p1980_p7 = por %p1979_p4, %p1978_p3 }
  0x1d   : > { %p1973_p1 = pnand %p1971_p0, %p2338_p13 }
  0x1f   : > { %p1974_p2 = pneg %p1973_p1 }
  0x21   : > { %p1981_p8 = pnand %p1980_p7, %p1974_p2 }
  0x23   : > { %1984 = shalt.err (!%p1981_p8)
}
  0x24   : > { %s2196_s16 = smov 64   ;;  %s2197_s19 = smov 4  }
  0x25   : > { %s2651_s5 = sld [smem:[#allocation23_spill]]  ;;  %s1996_s27 = scalar_lea.vmem %s380_s20, 256 }
  0x26   : > { %p1997_p11 = scmp.ne.s32.totalorder %s380_s20, %s1996_s27  ;;  %p2004_p3 = scmp.lt.s32.totalorder %s380_s20, %s380_s20 }
  0x27   : > { %p2005_p2 = scmp.lt.s32.totalorder %s1996_s27, %s1996_s27 }
  0x28   : > { %p1999_p0 = pnand %p1997_p11, %p2338_p13 }
  0x29   : > { %p2006_p4 = por %p2005_p2, %p2004_p3 }
  0x2a   : > { %p2000_p1 = pneg %p1999_p0 }
  0x2b   : > { %1843 = dma.hbm_to_vmem [thread:$0]  (!%p2332_p12), %s2651_s5, 256, %s354_s17, [#allocation6], %s2196_s16, %s2196_s16, %s2197_s19  }
  0x2c   : > { %p2007_p7 = pnand %p2006_p4, %p2000_p1 }
  0x2e   : > { %2010 = shalt.err (!%p2007_p7)
}
  0x2f   : > { %1849 = dma.hbm_to_vmem [thread:$0]  (!%p2332_p12), %s2630_s7, 256, %s380_s20, [#allocation9], %s2196_s16, %s2196_s16, %s2197_s19  }
  0x30   : > { %s2022_s23 = scalar_lea.vmem %s341_s28, 256  ;;  %p2030_p9 = scmp.lt.s32.totalorder %s341_s28, %s341_s28 }
  0x31   : > { %p2023_p8 = scmp.ne.s32.totalorder %s341_s28, %s2022_s23  ;;  %p2031_p3 = scmp.lt.s32.totalorder %s2022_s23, %s2022_s23 }
  0x33   : > { %p2025_p11 = pnand %p2023_p8, %p2338_p13  ;;  %p2032_p1 = por %p2031_p3, %p2030_p9 }
  0x35   : > { %p2026_p0 = pneg %p2025_p11 }
  0x37   : > { %p2033_p2 = pnand %p2032_p1, %p2026_p0 }
  0x39   : > { %2036 = shalt.err (!%p2033_p2)
}
  0x3a   : > { %1840 = dma.hbm_to_vmem [thread:$0]  (!%p2332_p12), %s2627_s4, 256, %s341_s28, [#allocation3], %s2196_s16, %s2196_s16, %s2197_s19  }
  0x3b   : > { %s2198_s17 = smov [#allocation7]   ;;  %s2199_s26 = smov [#allocation10]  }
  0x3c   : > { %s366_s20 = sshll.u32 %s2198_s17, 4  ;;  %s395_s30 = sshll.u32 %s2199_s26, 4  ;;  %s367_s20 = int_to_ptr.vmem [resolvable:$true] %s366_s20  ;;  %s396_s30 = int_to_ptr.vmem [resolvable:$true] %s395_s30 }
  0x3d   : > { %s2048_s5 = scalar_lea.vmem %s367_s20, 256  ;;  %p2056_p8 = scmp.lt.s32.totalorder %s367_s20, %s367_s20 }
  0x3e   : > { %p2049_p4 = scmp.ne.s32.totalorder %s367_s20, %s2048_s5  ;;  %p2057_p11 = scmp.lt.s32.totalorder %s2048_s5, %s2048_s5 }
  0x40   : > { %p2051_p9 = pnand %p2049_p4, %p2338_p13  ;;  %p2058_p0 = por %p2057_p11, %p2056_p8 }
  0x42   : > { %p2052_p7 = pneg %p2051_p9 }
  0x44   : > { %p2059_p3 = pnand %p2058_p0, %p2052_p7 }
  0x46   : > { %2062 = shalt.err (!%p2059_p3)
}
  0x47   : > { %1846 = dma.hbm_to_vmem [thread:$0]  (!%p2332_p12), %s2629_s6, 256, %s367_s20, [#allocation6], %s2196_s16, %s2196_s16, %s2197_s19  }
  0x48   : > { %s2074_s27 = scalar_lea.vmem %s396_s30, 256  ;;  %p2082_p9 = scmp.lt.s32.totalorder %s396_s30, %s396_s30 }
  0x49   : > { %p2075_p1 = scmp.ne.s32.totalorder %s396_s30, %s2074_s27  ;;  %p2083_p8 = scmp.lt.s32.totalorder %s2074_s27, %s2074_s27 }
  0x4b   : > { %p2077_p2 = pnand %p2075_p1, %p2338_p13  ;;  %p2084_p7 = por %p2083_p8, %p2082_p9 }
  0x4d   : > { %p2078_p4 = pneg %p2077_p2 }
  0x4f   : > { %p2085_p11 = pnand %p2084_p7, %p2078_p4 }
  0x51   : > { %2088 = shalt.err (!%p2085_p11)
}
  0x52   : > { %1852 = dma.hbm_to_vmem [thread:$0]  (!%p2332_p12), %s2632_s9, 256, %s396_s30, [#allocation9], %s2196_s16, %s2196_s16, %s2197_s19  }
  0x53   : > { %s2200_s17 = smov [#allocation11]  }
  0x54   : > { %s408_s20 = sshll.u32 %s2200_s17, 4  ;;  %s409_s20 = int_to_ptr.vmem [resolvable:$true] %s408_s20 }
  0x55   : > { %s2100_s26 = scalar_lea.vmem %s409_s20, 256  ;;  %p2108_p2 = scmp.lt.s32.totalorder %s409_s20, %s409_s20 }
  0x56   : > { %p2101_p0 = scmp.ne.s32.totalorder %s409_s20, %s2100_s26  ;;  %p2109_p4 = scmp.lt.s32.totalorder %s2100_s26, %s2100_s26 }
  0x58   : > { %p2103_p3 = pnand %p2101_p0, %p2338_p13  ;;  %p2110_p9 = por %p2109_p4, %p2108_p2 }
  0x5a   : > { %p2104_p1 = pneg %p2103_p3 }
  0x5c   : > { %p2111_p8 = pnand %p2110_p9, %p2104_p1 }
  0x5e   : > { %2114 = shalt.err (!%p2111_p8)
}
  0x5f   : > { %1855 = dma.hbm_to_vmem [thread:$0]  (!%p2332_p12), %s2633_s10, 256, %s409_s20, [#allocation12], %s2196_s16, %s2196_s16, %s2197_s19  }
  0x60   : > { %440 = sbr.rel (%p2324_p10) target bundleno = 2242 (0x8c2), region = 68  ;;  %p2652_p13 = scmp.eq.s32.totalorder (!%p2324_p10), %s2296_s25, 0 }
  0x65   : > { %2158 = dma.done.wait (%p2652_p13), [#allocation3], 256   ;;  %p2653_p7 = pmov %p2652_p13 }
  0x67   : > { %2160 = vsyncadd (%p2653_p7), [#allocation3], 4294967040  ;;  %p2654_p11 = pmov %p2653_p7 }
  0x68   : > { %p2655_p0 = pmov %p2653_p7 }
  0x69   : > { %2162 = dma.done.wait (%p2654_p11), [#allocation6], 512  }
  0x6a   : > { %2164 = vsyncadd (%p2655_p0), [#allocation6], 4294966784  ;;  %p2656_p3 = pmov %p2655_p0 }
  0x6b   : > { %p2657_p12 = pmov %p2655_p0 }
  0x6c   : > { %2166 = dma.done.wait (%p2656_p3), [#allocation9], 512  }
  0x6d   : > { %2168 = vsyncadd (%p2657_p12), [#allocation9], 4294966784  ;;  %p2658_p10 = pmov %p2655_p0 }
  0x6e   : > { %p2659_p1 = pmov %p2655_p0 }
  0x6f   : > { %2170 = dma.done.wait (%p2658_p10), [#allocation12], 256  }
  0x70   : > { %2172 = vsyncadd (%p2659_p1), [#allocation12], 4294967040  ;;  %p504_p2 = scmp.lt.s32.totalorder %s2296_s25, 1  ;;  %vm518_vm0 = vcmask 261120   ;;  %v1921_v3 = vld [vmem:[#allocation2 + $0x8] sm:$0xff]   ;;  %v2201_v5 = vmov 0.0   ;;  %v758_v44 = vlaneseq }
  0x71   : > { %v1922_v4 = vld [vmem:[#allocation7 + $0x8] sm:$0xff]   ;;  %1703 = vmatprep.subr.bf16.mxu1 %v2201_v5  ;;  %1719 = vmatprep.subr.bf16.mxu0 %v2201_v5  ;;  %v1923_v6 = vld [vmem:[#allocation2] sm:$0xff]   ;;  %vm2202_vm1 = vmmov 0   ;;  %v1925_v15 = vld [vmem:[#allocation5 + $0x8] sm:$0xff]   ;;  %vm779_vm2 = vcmask 1043456   ;;  %s2203_s5 = smov 120  }
  0x72   : > { %s2422_s15 = scalar_select %p504_p2, %s2296_s25, 1  ;;  %1704 = vmatpush3.bf16.msra.mxu1 %v1921_v3  ;;  %1720 = vmatpush3.bf16.msra.mxu0 %v1922_v4  ;;  %v1924_v7 = vld [vmem:[#allocation7] sm:$0xff]   ;;  %v1926_v17 = vld [vmem:[#allocation5] sm:$0xff]   ;;  %vm710_vm3 = vcmask 64512   ;;  %v759_v47 = vshrl.u32 %v758_v44, 7  ;;  %v1636_v59 = vld [vmem:[%s2625_s2 + $0x8] sm:$0xff] }
  0x73   : > { %1705 = vmatprep.subr.bf16.mxu1 %v2201_v5  ;;  %1721 = vmatprep.subr.bf16.mxu0 %v2201_v5  ;;  %v1624_v12 = vld [vmem:[%s2626_s3] ss:$0 sm:$0xff]  ;;  %s2204_s14 = smov 112   ;;  %s2205_s17 = smov 104   ;;  %v1639_v4 = vld [vmem:[%s2625_s2 + $0x10] sm:$0xff]  ;;  %vm1178_vm4 = vcmask 130048  }
  0x74   : > { %s1623_s18 = sshll.u32 %s2422_s15, 3  ;;  %1707 = vmatprep.mubr.msk.bf16.mxu1 %vm2202_vm1, %v2201_v5  ;;  %1723 = vmatprep.mubr.msk.bf16.mxu0 %vm2202_vm1, %v2201_v5  ;;  %s510_s28 = scalar_lea.vmem %s2624_s1, %s2422_s15  ;;  %v760_v49 = vsub.s32 0, %v759_v47  ;;  %v709_v50 = vld [vmem:[%s2625_s2] sm:$0xff]  ;;  %vm1180_vm5 = vcmask 195584   ;;  %vm1418_vm6 = vcmask 523264  }
  0x75   : > { %s507_s19 = scalar_lea.vmem %s2623_s0, %s1623_s18  ;;  %v513_v45 = vld [vmem:[%s510_s28] sm:$0x1]  ;;  %s501_s27 = sand.u32 1, %s2183_s22  }
  0x76   : > { %v2428_v0 = vld [vmem:[%s507_s19] sm:$0xff]  ;;  %1706 = vmatpush3.bf16.msra.mxu1 %v1923_v6  ;;  %1722 = vmatpush3.bf16.msra.mxu0 %v1924_v7  ;;  %v514_v46 = vsub.f32 1.0, %v513_v45  ;;  %s2209_s15 = smov [#allocation13]  }
  0x77   : > { %v517_v1 = vmul.f32 %v2428_v0, %v2428_v0  ;;  %1711 = vmatprep.subr.bf16.mxu1 %v2201_v5  ;;  %1733 = vmatprep.subr.bf16.mxu0 %v2201_v5  ;;  %s2119_s29 = sshll.u32 %s2209_s15, 4  ;;  %s2120_s29 = int_to_ptr.vmem [resolvable:$false] %s2119_s29 }
  0x78   : > { %v515_v48 = vmul.f32 -1e+09, %v514_v46  ;;  %s2121_s16 = scalar_lea.vmem %s2120_s29, 256 }
  0x79   : > { %v519_v2 = vsel %vm518_vm0, %v517_v1, 0.0 }
  0x7a   : > { %520 = vadd.xlane.f32.xlu0 %v519_v2  ;;  %v761_v51 = vrot.slane %v515_v48, %v760_v49 }
 0x103   : > { %v521_v8 = vpop.xlane.xlu0 %520 }
 0x104   : > { %v523_v9 = vmul.f32 0.03125, %v521_v8 }
 0x106   : > { %v524_v10 = vadd.f32 1e-06, %v523_v9 }
 0x108   : > { %1937 = vrsqrt.f32 %v524_v10 }
 0x115   : > { %v1938_v11 = vpop.eup %1937 }
 0x116   : > { %v526_v13 = vmul.f32 %v1938_v11, %v2428_v0 }
 0x118   : > { %v533_v14 = vmul.f32 %v1624_v12, %v526_v13  ;;  %v1642_v13 = vld [vmem:[%s2625_s2 + $0x18] sm:$0xff] }
 0x11a   : > { %v534_v16 = vpack.c.bf16 %v533_v14, %v533_v14 }
 0x11c   : > { %1708 = vmatmul.mubr.msk.bf16.vlgmr.msra.gmra.mxu1 %vm518_vm0, %v534_v16  ;;  %1724 = vmatmul.mubr.msk.bf16.vlgmr.msra.gmra.mxu0 %vm518_vm0, %v534_v16 }
 0x11d   : > { %1712 = vmatpush3.bf16.msra.mxu1 %v1925_v15  ;;  %1715 = vmatprep.mubr.msk.bf16.mxu1 %vm2202_vm1, %v2201_v5 }
 0x11e   : > { %1713 = vmatprep.subr.bf16.mxu1 %v2201_v5  ;;  %1735 = vmatprep.mubr.msk.bf16.mxu0 %vm2202_vm1, %v2201_v5 }
 0x121   : > { %1714 = vmatpush3.bf16.msra.mxu1 %v1926_v17 }
 0x122   : > { %1727 = vmatprep.subr.bf16.mxu1 %v2201_v5 }
 0x124   : > { %1716 = vmatmul.mubr.msk.bf16.vlgmr.msra.gmra.mxu1 %vm518_vm0, %v534_v16 }
 0x125   : > { %1729 = vmatprep.mubr.msk.bf16.mxu1 %vm2202_vm1, %v2201_v5 }
 0x1dc   : > { %v588_v18 = vpop.f32.mrf.mxu1  ;;  %v700_v19 = vpop.f32.mrf.mxu0 }
 0x1dd   : > { %v706_v20 = vpack.c.bf16 %v588_v18, %v588_v18  ;;  %v2458_v21 = vpack.c.bf16 %v700_v19, %v700_v19 }
 0x1de   : > { %v1709_v22 = vpop.f32.mrf.mxu1  ;;  %v1725_v23 = vpop.f32.mrf.mxu0 }
 0x1df   : > { %826 = vrot.lane.b32.xlu1 %v706_v20, %s2203_s5  ;;  %v781_v24 = vsel %vm779_vm2, %v2458_v21, 0 }
 0x1e0   : > { %v591_v25 = vpop.f32.mrf.mxu1  ;;  %v703_v26 = vpop.f32.mrf.mxu0  ;;  %1734 = vmatpush3.bf16.msra.mxu0 %v781_v24 }
 0x1e1   : > { %1745 = vmatprep.subr.bf16.mxu0 %v2201_v5 }
 0x1e2   : > { %v1710_v27 = vpop.f32.mrf.mxu1  ;;  %v1726_v28 = vpop.f32.mrf.mxu0 }
 0x1e4   : > { %v644_v29 = vpop.f32.mrf.mxu1 }
 0x1e5   : > { %v707_v30 = vpack.c.bf16 %v644_v29, %v644_v29 }
 0x1e6   : > { %v1717_v31 = vpop.f32.mrf.mxu1 }
 0x1e7   : > { %943 = vrot.lane.b32.xlu1 %v707_v30, %s2204_s14  ;;  %829 = vrot.lane.b32.xlu0 %v707_v30, %s2203_s5  ;;  %v715_v32 = vsel %vm710_vm3, %v707_v30, 0 }
 0x1e8   : > { %v647_v33 = vpop.f32.mrf.mxu1  ;;  %1728 = vmatpush3.bf16.xpose.msra.mxu1 %v715_v32 }
 0x1e9   : > { %1739 = vmatprep.subr.bf16.mxu1 %v2201_v5 }
 0x1ea   : > { %v1718_v34 = vpop.f32.mrf.mxu1 }
 0x1eb   : > { %941 = vrot.lane.b32.xlu1 %v706_v20, %s2204_s14 }
 0x1ef   : > { %1056 = vrot.lane.b32.xlu1 %v707_v30, %s2205_s17  ;;  %1730 = vmatmul.mubr.msk.bf16.vlgmr.msra.gmra.mxu1 %vm710_vm3, %v706_v20 }
 0x1f0   : > { %1741 = vmatprep.mubr.msk.bf16.mxu1 %vm2202_vm1, %v2201_v5 }
 0x1f3   : > { %1054 = vrot.lane.b32.xlu1 %v706_v20, %s2205_s17 }
 0x251   : > { %v827_v35 = vpop.permute.xlu1 %826 }
 0x259   : > { %v830_v36 = vpop.permute.xlu0 %829  ;;  %v944_v38 = vpop.permute.xlu1 %943 }
 0x25a   : > { %v835_v37 = vsel %vm710_vm3, %v830_v36, 0  ;;  %v949_v40 = vsel %vm710_vm3, %v944_v38, 0 }
 0x25b   : > { %1740 = vmatpush3.bf16.xpose.msra.mxu1 %v835_v37 }
 0x25c   : > { %1751 = vmatprep.subr.bf16.mxu1 %v2201_v5 }
 0x25d   : > { %v942_v39 = vpop.permute.xlu1 %941 }
 0x261   : > { %v1057_v41 = vpop.permute.xlu1 %1056 }
 0x262   : > { %1742 = vmatmul.mubr.msk.bf16.vlgmr.msra.gmra.mxu1 %vm710_vm3, %v827_v35  ;;  %v1062_v42 = vsel %vm710_vm3, %v1057_v41, 0 }
 0x263   : > { %1752 = vmatpush3.bf16.xpose.msra.mxu1 %v949_v40  ;;  %1753 = vmatprep.mubr.msk.bf16.mxu1 %vm2202_vm1, %v2201_v5 }
 0x264   : > { %1763 = vmatprep.subr.bf16.mxu1 %v2201_v5 }
 0x265   : > { %v1055_v43 = vpop.permute.xlu1 %1054 }
 0x26a   : > { %1754 = vmatmul.mubr.msk.bf16.vlgmr.msra.gmra.mxu1 %vm710_vm3, %v942_v39 }
 0x26b   : > { %1764 = vmatpush3.bf16.xpose.msra.mxu1 %v1062_v42  ;;  %1765 = vmatprep.mubr.msk.bf16.mxu1 %vm2202_vm1, %v2201_v5 }
 0x26c   : > { %1775 = vmatprep.subr.bf16.mxu1 %v2201_v5 }
 0x272   : > { %1766 = vmatmul.mubr.msk.bf16.vlgmr.msra.gmra.mxu1 %vm710_vm3, %v1055_v43 }
 0x273   : > { %1779 = vmatprep.mubr.msk.bf16.mxu1 %vm2202_vm1, %v2201_v5 }
 0x2af   : > { %v751_v52 = vpop.f32.mrf.mxu1 }
 0x2b0   : > { %v752_v53 = vadd.f32 %v751_v52, %v709_v50 }
 0x2b1   : > { %v1731_v54 = vpop.f32.mrf.mxu1 }
 0x2b2   : > { %v763_v55 = vadd.f32 %v761_v51, %v752_v53 }
 0x2b3   : > { %v754_v56 = vpop.f32.mrf.mxu1 }
 0x2b4   : > { %v764_v57 = vsel %vm710_vm3, %v763_v55, -inf }
 0x2b5   : > { %765 = vmax.xlane.f32.xlu1 %v764_v57  ;;  %v1732_v58 = vpop.f32.mrf.mxu1 }
 0x322   : > { %v871_v60 = vpop.f32.mrf.mxu1 }
 0x323   : > { %v872_v61 = vadd.f32 %v1636_v59, %v871_v60 }
 0x324   : > { %v1743_v62 = vpop.f32.mrf.mxu1 }
 0x325   : > { %v877_v63 = vadd.f32 %v872_v61, %v761_v51 }
 0x326   : > { %v874_v1 = vpop.f32.mrf.mxu1 }
 0x327   : > { %v878_v2 = vsel %vm710_vm3, %v877_v63, -inf }
 0x328   : > { %879 = vmax.xlane.f32.xlu0 %v878_v2  ;;  %v1744_v3 = vpop.f32.mrf.mxu1 }
 0x32a   : > { %v985_v6 = vpop.f32.mrf.mxu1 }
 0x32b   : > { %v986_v7 = vadd.f32 %v1639_v4, %v985_v6  ;;  %v1927_v4 = vld [vmem:[#allocation8 + $0x8] sm:$0xff]  }
 0x32c   : > { %v1755_v8 = vpop.f32.mrf.mxu1  ;;  %1776 = vmatpush3.bf16.msra.mxu1 %v1927_v4 }
 0x32d   : > { %v991_v9 = vadd.f32 %v986_v7, %v761_v51  ;;  %1777 = vmatprep.subr.bf16.mxu1 %v2201_v5  ;;  %v1928_v8 = vld [vmem:[#allocation8] sm:$0xff]  }
 0x32e   : > { %v988_v10 = vpop.f32.mrf.mxu1 }
 0x32f   : > { %v992_v11 = vsel %vm710_vm3, %v991_v9, -inf }
 0x330   : > { %993 = vmax.xlane.f32.xlu1 %v992_v11  ;;  %v1756_v12 = vpop.f32.mrf.mxu1  ;;  %1778 = vmatpush3.bf16.msra.mxu1 %v1928_v8 }
 0x331   : > { %1791 = vmatprep.subr.bf16.mxu1 %v2201_v5 }
 0x332   : > { %v1098_v14 = vpop.f32.mrf.mxu1 }
 0x333   : > { %v1099_v15 = vadd.f32 %v1642_v13, %v1098_v14 }
 0x334   : > { %v1767_v16 = vpop.f32.mrf.mxu1 }
 0x335   : > { %v1104_v17 = vadd.f32 %v1099_v15, %v761_v51 }
 0x336   : > { %v1101_v18 = vpop.f32.mrf.mxu1 }
 0x337   : > { %v1105_v19 = vsel %vm710_vm3, %v1104_v17, -inf }
 0x338   : > { %1106 = vmax.xlane.f32.xlu0 %v1105_v19  ;;  %v1768_v20 = vpop.f32.mrf.mxu1 }
 0x33e   : > { %v766_v22 = vpop.xlane.xlu1 %765 }
 0x33f   : > { %v767_v23 = vsub.f32 %v763_v55, %v766_v22 }
 0x341   : > { %v768_v24 = vmul.f32 1.442695, %v767_v23 }
 0x343   : > { %1939 = vpow2.f32 %v768_v24 }
 0x350   : > { %v1940_v25 = vpop.eup %1939 }
 0x351   : > { %v770_v26 = vsel %vm710_vm3, %v1940_v25, 0.0 }
 0x352   : > { %771 = vadd.xlane.f32.xlu1 %v770_v26 }
 0x363   : > { %891 = vrot.lane.b32.xlu1 %v2458_v21, %s2203_s5  ;;  %s2206_s5 = smov 8  }
 0x3b1   : > { %v880_v27 = vpop.xlane.xlu0 %879 }
 0x3b2   : > { %v881_v28 = vsub.f32 %v877_v63, %v880_v27 }
 0x3b4   : > { %v882_v29 = vmul.f32 1.442695, %v881_v28 }
 0x3b6   : > { %1941 = vpow2.f32 %v882_v29 }
 0x3b9   : > { %v994_v30 = vpop.xlane.xlu1 %993 }
 0x3ba   : > { %v995_v31 = vsub.f32 %v991_v9, %v994_v30 }
 0x3bc   : > { %v996_v32 = vmul.f32 1.442695, %v995_v31 }
 0x3be   : > { %1943 = vpow2.f32 %v996_v32 }
 0x3c1   : > { %v1107_v33 = vpop.xlane.xlu0 %1106 }
 0x3c2   : > { %v1108_v34 = vsub.f32 %v1104_v17, %v1107_v33 }
 0x3c3   : > { %v1942_v35 = vpop.eup %1941 }
 0x3c4   : > { %v1109_v36 = vmul.f32 1.442695, %v1108_v34  ;;  %v884_v37 = vsel %vm710_vm3, %v1942_v35, 0.0  ;;  %v1929_v34 = vld [vmem:[#allocation10 + $0x8] sm:$0xff]  }
 0x3c5   : > { %885 = vadd.xlane.f32.xlu0 %v884_v37  ;;  %v1932_v37 = vld [vmem:[#allocation11] sm:$0xff]  }
 0x3c6   : > { %1945 = vpow2.f32 %v1109_v36  ;;  %v1931_v36 = vld [vmem:[#allocation10] sm:$0xff]  }
 0x3cb   : > { %v1944_v38 = vpop.eup %1943 }
 0x3cc   : > { %v998_v39 = vsel %vm710_vm3, %v1944_v38, 0.0 }
 0x3cd   : > { %999 = vadd.xlane.f32.xlu1 %v998_v39 }
 0x3d3   : > { %v1946_v40 = vpop.eup %1945 }
 0x3d4   : > { %v1111_v41 = vsel %vm710_vm3, %v1946_v40, 0.0 }
 0x3d5   : > { %1112 = vadd.xlane.f32.xlu0 %v1111_v41  ;;  %v1648_v41 = vld [vmem:[%s2631_s8] ss:$0 sm:$0xff] }
 0x3db   : > { %v772_v42 = vpop.xlane.xlu1 %771 }
 0x3dc   : > { %1947 = vrcp.f32 %v772_v42 }
 0x3de   : > { %1117 = vrot.lane.b32.xlu1 %v2458_v21, %s2205_s17  ;;  %s2208_s17 = smov 24  }
 0x3df   : > { %v892_v45 = vpop.permute.xlu1 %891 }
 0x3e0   : > { %v897_v47 = vsel %vm779_vm2, %v892_v45, 0  ;;  %v1933_v45 = vld [vmem:[%s2634_s11 + $0x18] sm:$0xff]  }
 0x3e9   : > { %v1948_v43 = vpop.eup %1947 }
 0x3ea   : > { %v774_v44 = vmul.f32 %v1948_v43, %v1940_v25 }
 0x3eb   : > { %1004 = vrot.lane.b32.xlu0 %v2458_v21, %s2204_s14  ;;  %s2207_s14 = smov 16  }
 0x3ec   : > { %v775_v46 = vpack.c.bf16 %v774_v44, %v774_v44 }
 0x3ee   : > { %1736 = vmatmul.mubr.msk.bf16.vlgmr.msra.gmra.mxu0 %vm710_vm3, %v775_v46  ;;  %v1934_v46 = vld [vmem:[%s2634_s11 + $0x10] sm:$0xff]  }
 0x3ef   : > { %1746 = vmatpush3.bf16.msra.mxu0 %v897_v47  ;;  %1747 = vmatprep.mubr.msk.bf16.mxu0 %vm2202_vm1, %v2201_v5  ;;  %v1935_v47 = vld [vmem:[%s2634_s11 + $0x8] sm:$0xff]  }
 0x3f0   : > { %1757 = vmatprep.subr.bf16.mxu0 %v2201_v5 }
 0x44e   : > { %v886_v48 = vpop.xlane.xlu0 %885 }
 0x44f   : > { %1949 = vrcp.f32 %v886_v48  ;;  %v1936_v48 = vld [vmem:[%s2634_s11] sm:$0xff]  }
 0x456   : > { %v1000_v49 = vpop.xlane.xlu1 %999 }
 0x457   : > { %1951 = vrcp.f32 %v1000_v49 }
 0x45a   : > { %v1118_v57 = vpop.permute.xlu1 %1117 }
 0x45b   : > { %v1123_v59 = vsel %vm779_vm2, %v1118_v57, 0 }
 0x45c   : > { %v1950_v50 = vpop.eup %1949 }
 0x45d   : > { %v888_v51 = vmul.f32 %v1950_v50, %v1942_v35  ;;  %v1930_v35 = vld [vmem:[#allocation11 + $0x8] sm:$0xff]  }
 0x45e   : > { %v1113_v52 = vpop.xlane.xlu0 %1112 }
 0x45f   : > { %1953 = vrcp.f32 %v1113_v52  ;;  %v889_v21 = vpack.c.bf16 %v888_v51, %v888_v51 }
 0x461   : > { %1748 = vmatmul.mubr.msk.bf16.vlgmr.msra.gmra.mxu0 %vm710_vm3, %v889_v21 }
 0x462   : > { %v1005_v53 = vpop.permute.xlu0 %1004  ;;  %1759 = vmatprep.mubr.msk.bf16.mxu0 %vm2202_vm1, %v2201_v5 }
 0x463   : > { %v1010_v54 = vsel %vm779_vm2, %v1005_v53, 0 }
 0x464   : > { %v1952_v55 = vpop.eup %1951  ;;  %1758 = vmatpush3.bf16.msra.mxu0 %v1010_v54 }
 0x465   : > { %1769 = vmatprep.subr.bf16.mxu0 %v2201_v5  ;;  %v1002_v56 = vmul.f32 %v1952_v55, %v1944_v38 }
 0x467   : > { %v1003_v58 = vpack.c.bf16 %v1002_v56, %v1002_v56 }
 0x469   : > { %1760 = vmatmul.mubr.msk.bf16.vlgmr.msra.gmra.mxu0 %vm710_vm3, %v1003_v58 }
 0x46a   : > { %1770 = vmatpush3.bf16.msra.mxu0 %v1123_v59  ;;  %1771 = vmatprep.mubr.msk.bf16.mxu0 %vm2202_vm1, %v2201_v5 }
 0x46b   : > { %1783 = vmatprep.subr.bf16.mxu0 %v2201_v5 }
 0x46c   : > { %v1954_v60 = vpop.eup %1953 }
 0x46d   : > { %v1115_v61 = vmul.f32 %v1954_v60, %v1946_v40 }
 0x46f   : > { %v1116_v62 = vpack.c.bf16 %v1115_v61, %v1115_v61 }
 0x471   : > { %1772 = vmatmul.mubr.msk.bf16.vlgmr.msra.gmra.mxu0 %vm710_vm3, %v1116_v62 }
 0x472   : > { %1787 = vmatprep.mubr.msk.bf16.mxu0 %vm2202_vm1, %v2201_v5  ;;  %1784 = vmatpush3.bf16.msra.mxu0 %v1929_v34 }
 0x473   : > { %1785 = vmatprep.subr.bf16.mxu0 %v2201_v5 }
 0x476   : > { %1786 = vmatpush3.bf16.msra.mxu0 %v1931_v36 }
 0x477   : > { %1799 = vmatprep.subr.bf16.mxu0 %v2201_v5 }
 0x4ae   : > { %v817_v63 = vpop.f32.mrf.mxu0 }
 0x4b0   : > { %v1737_v1 = vpop.f32.mrf.mxu0 }
 0x4b2   : > { %v820_v2 = vpop.f32.mrf.mxu0 }
 0x4b4   : > { %v1738_v3 = vpop.f32.mrf.mxu0 }
 0x521   : > { %v933_v6 = vpop.f32.mrf.mxu0 }
 0x522   : > { %1166 = vrot.lane.b32.xlu1 %v933_v6, %s2206_s5  ;;  %s1622_s5 = sshll.u32 %s501_s27, 3 }
 0x523   : > { %v1749_v7 = vpop.f32.mrf.mxu0 }
 0x525   : > { %v936_v9 = vpop.f32.mrf.mxu0 }
 0x527   : > { %v1750_v10 = vpop.f32.mrf.mxu0 }
 0x529   : > { %v1046_v11 = vpop.f32.mrf.mxu0 }
 0x52a   : > { %1170 = vrot.lane.b32.xlu0 %v1046_v11, %s2207_s14  ;;  %s1661_s14 = sshll.u32 %s2296_s25, 7  ;;  %s1465_s25 = scalar_lea.sflag [#allocation4], %s501_s27 }
 0x52b   : > { %v1761_v12 = vpop.f32.mrf.mxu0  ;;  %s2581_s30 = scalar_lea.hbm %s2635_s12, %s1661_s14 }
 0x52d   : > { %v1049_v13 = vpop.f32.mrf.mxu0 }
 0x52f   : > { %v1762_v14 = vpop.f32.mrf.mxu0 }
 0x531   : > { %v1159_v15 = vpop.f32.mrf.mxu0 }
 0x532   : > { %1174 = vrot.lane.b32.xlu1 %v1159_v15, %s2208_s17  ;;  %s503_s17 = scalar_lea.vmem [#allocation13], %s1622_s5 }
 0x533   : > { %v1773_v16 = vpop.f32.mrf.mxu0  ;;  %s1478_s20 = sshll.u32 %s503_s17, 4  ;;  %s2583_s20 = int_to_ptr.vmem [resolvable:$true] %s1478_s20 }
 0x534   : > { %s2115_s18 = scalar_lea.vmem %s2583_s20, 128  ;;  %p2122_p13 = scmp.lt.s32.totalorder %s2583_s20, %s2120_s29 }
 0x535   : > { %v1162_v17 = vpop.f32.mrf.mxu0  ;;  %p2116_p4 = scmp.ne.s32.totalorder %s2583_s20, %s2115_s18  ;;  %p2123_p7 = scmp.lt.s32.totalorder %s2121_s16, %s2115_s18 }
 0x537   : > { %v1774_v18 = vpop.f32.mrf.mxu0  ;;  %p2117_p9 = pnand %p2116_p4, %p2313_p5  ;;  %p2124_p11 = por %p2123_p7, %p2122_p13 }
 0x539   : > { %p2118_p8 = pneg %p2117_p9 }
 0x53b   : > { %p2125_p0 = pnand %p2124_p11, %p2118_p8 }
 0x594   : > { %v1167_v19 = vpop.permute.xlu1 %1166 }
 0x595   : > { %v1177_v22 = vsel %vm710_vm3, %v817_v63, %v1167_v19 }
 0x59c   : > { %v1171_v20 = vpop.permute.xlu0 %1170 }
 0x59d   : > { %v1179_v23 = vsel %vm1178_vm4, %v1177_v22, %v1171_v20 }
 0x5a4   : > { %v1175_v24 = vpop.permute.xlu1 %1174 }
 0x5a5   : > { %v1181_v25 = vsel %vm1180_vm5, %v1179_v23, %v1175_v24 }
 0x5a6   : > { %v1182_v26 = vpack.c.bf16 %v1181_v25, %v1181_v25 }
 0x5a8   : > { %1780 = vmatmul.mubr.msk.bf16.vlgmr.msra.gmra.mxu1 %vm518_vm0, %v1182_v26 }
 0x5a9   : > { %1795 = vmatprep.mubr.msk.bf16.mxu1 %vm2202_vm1, %v2201_v5  ;;  %1792 = vmatpush3.bf16.msra.mxu1 %v1930_v35 }
 0x5aa   : > { %1793 = vmatprep.subr.bf16.mxu1 %v2201_v5 }
 0x5ad   : > { %1794 = vmatpush3.bf16.msra.mxu1 %v1932_v37 }
 0x668   : > { %v1236_v27 = vpop.f32.mrf.mxu1 }
 0x669   : > { %v2544_v28 = vadd.f32 %v1236_v27, %v2428_v0 }
 0x66a   : > { %v1781_v29 = vpop.f32.mrf.mxu1 }
 0x66b   : > { %v1244_v30 = vmul.f32 %v2544_v28, %v2544_v28 }
 0x66c   : > { %v1239_v31 = vpop.f32.mrf.mxu1 }
 0x66d   : > { %v1245_v32 = vsel %vm518_vm0, %v1244_v30, 0.0 }
 0x66e   : > { %1246 = vadd.xlane.f32.xlu0 %v1245_v32  ;;  %v1782_v33 = vpop.f32.mrf.mxu1 }
 0x6f7   : > { %v1247_v0 = vpop.xlane.xlu0 %1246 }
 0x6f8   : > { %v1248_v38 = vmul.f32 0.03125, %v1247_v0 }
 0x6fa   : > { %v1249_v39 = vadd.f32 1e-06, %v1248_v38 }
 0x6fc   : > { %1955 = vrsqrt.f32 %v1249_v39 }
 0x709   : > { %v1956_v40 = vpop.eup %1955 }
 0x70a   : > { %v1251_v42 = vmul.f32 %v1956_v40, %v2544_v28 }
 0x70c   : > { %v1258_v43 = vmul.f32 %v1648_v41, %v1251_v42 }
 0x70e   : > { %v1259_v44 = vpack.c.bf16 %v1258_v43, %v1258_v43 }
 0x710   : > { %1788 = vmatmul.mubr.msk.bf16.vlgmr.msra.gmra.mxu0 %vm518_vm0, %v1259_v44  ;;  %1796 = vmatmul.mubr.msk.bf16.vlgmr.msra.gmra.mxu1 %vm518_vm0, %v1259_v44 }
 0x711   : > { %1807 = vmatprep.mubr.msk.bf16.mxu0 %vm2202_vm1, %v2201_v5  ;;  %1800 = vmatpush3.bf16.msra.mxu0 %v1933_v45 }
 0x712   : > { %1801 = vmatprep.subr.bf16.mxu0 %v2201_v5 }
 0x715   : > { %1802 = vmatpush3.bf16.msra.mxu0 %v1934_v46 }
 0x716   : > { %1803 = vmatprep.subr.bf16.mxu0 %v2201_v5 }
 0x719   : > { %1804 = vmatpush3.bf16.msra.mxu0 %v1935_v47 }
 0x71a   : > { %1805 = vmatprep.subr.bf16.mxu0 %v2201_v5 }
 0x71d   : > { %1806 = vmatpush3.bf16.msra.mxu0 %v1936_v48 }
 0x7d0   : > { %v1313_v49 = vpop.f32.mrf.mxu0  ;;  %v1378_v50 = vpop.f32.mrf.mxu1 }
 0x7d1   : > { %v1320_v51 = vmul.f32 0.044715, %v1313_v49  ;;  %v1319_v61 = vmul.f32 0.5, %v1313_v49 }
 0x7d2   : > { %v1789_v52 = vpop.f32.mrf.mxu0  ;;  %v1797_v21 = vpop.f32.mrf.mxu1 }
 0x7d3   : > { %v1321_v53 = vmul.f32 %v1320_v51, %v1313_v49 }
 0x7d4   : > { %v1316_v54 = vpop.f32.mrf.mxu0  ;;  %v1381_v55 = vpop.f32.mrf.mxu1 }
 0x7d5   : > { %v1322_v56 = vmul.f32 %v1321_v53, %v1313_v49 }
 0x7d6   : > { %v1790_v57 = vpop.f32.mrf.mxu0  ;;  %v1798_v58 = vpop.f32.mrf.mxu1 }
 0x7d7   : > { %v1323_v59 = vadd.f32 %v1322_v56, %v1313_v49 }
 0x7d9   : > { %v1324_v5 = vmul.f32 0.7978846, %v1323_v59 }
 0x7db   : > { %1957 = vtanh.f32 %v1324_v5 }
 0x7e8   : > { %v1958_v60 = vpop.eup %1957 }
 0x7e9   : > { %v1326_v62 = vadd.f32 1.0, %v1958_v60 }
 0x7eb   : > { %v1327_v63 = vmul.f32 %v1326_v62, %v1319_v61 }
 0x7ed   : > { %v1384_v1 = vmul.f32 %v1378_v50, %v1327_v63 }
 0x7ef   : > { %v1385_v2 = vpack.c.bf16 %v1384_v1, %v1384_v1 }
 0x7f1   : > { %1808 = vmatmul.mubr.msk.bf16.vlgmr.msra.gmra.mxu0 %vm1418_vm6, %v1385_v2 }
 0x8b1   : > { %v1456_v3 = vpop.f32.mrf.mxu0 }
 0x8b2   : > { %v1462_v4 = vadd.f32 %v1456_v3, %v2544_v28 }
 0x8b3   : > { %v1809_v6 = vpop.f32.mrf.mxu0 }
 0x8b4   : > { %1463 = vst.msk [vmem:[%s503_s17] sm:$0xff] %vm518_vm0, %v1462_v4 }
 0x8b5   : > { %v1459_v7 = vpop.f32.mrf.mxu0 }
 0x8b6   : > { %2128 = shalt.err (!%p2125_p0)
}
 0x8b7   : > { %s2129_s19 = scalar_lea.hbm %s2581_s30, 128  ;;  %s2133_s5 = scalar_lea.hbm %s2635_s12, 256 }
 0x8b8   : > { %p2130_p3 = scmp.ne.s32.totalorder %s2581_s30, %s2129_s19  ;;  %p2134_p1 = scmp.lt.s32.totalorder %s2581_s30, %s2635_s12 }
 0x8b9   : > { %p2135_p2 = scmp.lt.s32.totalorder %s2133_s5, %s2129_s19 }
 0x8ba   : > { %p2131_p12 = pnand %p2130_p3, %p2313_p5 }
 0x8bb   : > { %p2136_p4 = por %p2135_p2, %p2134_p1 }
 0x8bc   : > { %p2132_p10 = pneg %p2131_p12 }
 0x8be   : > { %p2137_p9 = pnand %p2136_p4, %p2132_p10 }
 0x8c0   : > { %2140 = shalt.err (!%p2137_p9)
}
 0x8c1   : > { %1835 = dma.vmem_to_hbm [thread:$0]  (%p2313_p5), %s2583_s20, 128, %s2581_s30, %s1465_s25   ;;  %v1810_v8 = vpop.f32.mrf.mxu0 }
 0x8c2 PF: > { %p1872_p8 = scmp.ge.s32.totalorder %s2191_s24, 2  ;;  %s1490_s28 = sand.u32 1, %s2179_s21  }
 0x8c3   : > { %s1491_s18 = scalar_lea.sflag [#allocation4], %s1490_s28 }
 0x8c4   : > { %p1857_p13 = pnand %p1872_p8, %p2317_p6 }
 0x8c6   : > { %p1858_p7 = pneg %p1857_p13 }
 0x8c8   : > { %2174 = dma.done.wait (%p1858_p7), %s1491_s18, 128  }
 0x8c9   : > { %2176 = vsyncadd (%p1858_p7), %s1491_s18, 4294967168  ;;  %s2661_s24 = sld [smem:[#allocation20_spill]]  ;;  %s2664_s21 = smov %s2183_s22 }
 0x8ca   : > { %s2662_s15 = sld [smem:[#allocation19_spill]] }
 0x8cb   : > { %s2663_s23 = sld [smem:[#allocation21_spill]] }
 0x8cf   : > { %p26_p11 = scmp.ge.s32.totalorder %s2661_s24, 4  }
 0x8d0   : > { %s2665_s22 = smov %s2662_s15 }
 0x8d1   :  { %28 = sbr.rel (!%p26_p11) target bundleno = 9 (0x9), region = 134 }
 0x8d6   :  { %1496 = vsyncpa [#allocation3], 1 }
 0x8d7   :  { %1498 = vsyncpa [#allocation3 + $0x1], 1 }
 0x8d8   :  { %1499 = vsyncpa [#allocation6], 1 }
 0x8d9   :  { %1500 = vsyncpa [#allocation9], 1 }
 0x8da   :  { %1501 = vsyncpa [#allocation12], 1 }
 0x8db   :  { %1502 = vsyncpa [#allocation4], 1 }
 0x8dc   :  { %1504 = vsyncpa [#allocation4 + $0x1], 1 }

</bundles_post_ra>
